<compile_context>
chip_gen: v7x
topology: tpu7x:2x2x1
jax: 0.10.0
libtpu: 0.0.40
codegen_flags: <defaults>
</compile_context>

<pallas_src>
import functools

import jax
import jax.numpy as jnp
from jax.experimental import pallas as pl
from jax.experimental.pallas import tpu as pltpu


def _round_up(x, m):
    return ((x + m - 1) // m) * m


def _cdiv(a, b):
    return -(-a // b)


def policy_kernel(state_ref, eps_ref,
                  w1_ref, b1_ref, w2_ref, b2_ref,
                  wh_ref, bh_ref,
                  action_ref, logprob_ref, *, n_actions, a_head):
    # Batch on lanes: every tensor below is [rows, tile_b].
    x = state_ref[...]                                                  # [d_in, tb] bf16

    h1 = jnp.dot(w1_ref[...], x, preferred_element_type=jnp.float32) + b1_ref[...]
    h1 = jnp.maximum(h1, 0.0).astype(jnp.bfloat16)                      # [256, tb]

    h2 = jnp.dot(w2_ref[...], h1, preferred_element_type=jnp.float32) + b2_ref[...]
    h2 = jnp.maximum(h2, 0.0)                                           # [256, tb] f32

    # Fused mu/logstd head, kept in f32 (negligible FLOPs, full logprob accuracy).
    heads = jnp.dot(wh_ref[...], h2, preferred_element_type=jnp.float32) + bh_ref[...]
    mu = heads[:a_head, :]                         # sublane-group-aligned static slices
    logstd = jnp.clip(heads[a_head:, :], -20.0, 2.0)
    std = jnp.exp(logstd)

    eps = eps_ref[...]                                                  # [a_head, tb] f32
    z = mu + std * eps                             # base Normal rsample (pre-squash)

    # Compose([Affine(0,2), Sigmoid, Affine(-1,2)])(z) == 2*sigmoid(2z)-1 == tanh(z)
    action_ref[...] = jnp.tanh(z)                  # lane-dense unmasked store

    # log|det d(action)/dz| = log(1 - tanh(z)^2) = 2*(log2 - z - softplus(-2z))
    log_det = 2.0 * (jnp.log(2.0) - z - jax.nn.softplus(-2.0 * z))
    # base Normal log prob per element: -0.5*eps^2 - logstd - 0.5*log(2*pi).
    # Padded head rows have mu = logstd = eps = 0 -> contribution ~0, so the
    # plain sublane sum over all a_head rows equals the sum over the real A rows.
    lp_elem = -0.5 * eps * eps - logstd - log_det
    logprob_ref[...] = (jnp.sum(lp_elem, axis=0, keepdims=True)
                        - 0.5 * n_actions * jnp.log(2.0 * jnp.pi))


def policy_forward(state, eps, params, *, tile_b_max=4096):
    """state: [B, d_in] f32, eps: [B, A] f32 standard-normal noise."""
    B, d_in = state.shape
    A = params["wmu"].shape[1]
    hidden = params["w1"].shape[1]
    a_head = _round_up(max(A, 1), 8)               # sublane-aligned head rows

    # Batch tile: multiple of 128 (lane width).  For large B, use >=2 grid
    # programs so ("parallel",) can split across the two v7x TensorCores;
    # single-TC chips (v5e/v6e) are indifferent and tile_b_max can be swept
    # higher there to amortize the ~0.35 us per-step overhead.
    min_prog = 2 if B >= 256 else 1
    n_prog = max(min_prog, _cdiv(B, tile_b_max))
    tile_b = min(tile_b_max, _round_up(_cdiv(B, n_prog), 128))
    b_pad = _round_up(B, tile_b)

    # Batch-on-lane operands (transpose + pad in the wrapper; tiny XLA ops).
    state_t = jnp.pad(state.T, ((0, 0), (0, b_pad - B))).astype(jnp.bfloat16)  # [d_in, b_pad]
    eps_t = jnp.pad(eps.T, ((0, a_head - A), (0, b_pad - B)))                  # [a_head, b_pad]

    def pad_rows(m, rows):
        return jnp.pad(m, ((0, rows - m.shape[0]), (0, 0)))

    # Weights transposed so every matmul is W^T @ x (batch stays on lanes).
    w1t = params["w1"].T.astype(jnp.bfloat16)              # [hidden, d_in]
    w2t = params["w2"].T.astype(jnp.bfloat16)              # [hidden, hidden]
    b1c = params["b1"].reshape(hidden, 1)                  # [hidden, 1] f32
    b2c = params["b2"].reshape(hidden, 1)
    # Fused head [2*a_head, hidden] in f32; padded rows are zero => logprob-safe.
    wht = jnp.concatenate([pad_rows(params["wmu"].T, a_head),
                           pad_rows(params["wls"].T, a_head)], axis=0)
    bhc = jnp.concatenate([pad_rows(params["bmu"].reshape(A, 1), a_head),
                           pad_rows(params["bls"].reshape(A, 1), a_head)], axis=0)

    grid = (b_pad // tile_b,)

    in_specs = [
        pl.BlockSpec((d_in, tile_b), lambda i: (0, i)),        # state  (batch-tiled)
        pl.BlockSpec((a_head, tile_b), lambda i: (0, i)),      # eps    (batch-tiled)
        pl.BlockSpec((hidden, d_in), lambda i: (0, 0)),        # W1^T   (VMEM-resident)
        pl.BlockSpec((hidden, 1), lambda i: (0, 0)),           # b1
        pl.BlockSpec((hidden, hidden), lambda i: (0, 0)),      # W2^T
        pl.BlockSpec((hidden, 1), lambda i: (0, 0)),           # b2
        pl.BlockSpec((2 * a_head, hidden), lambda i: (0, 0)),  # fused head weights
        pl.BlockSpec((2 * a_head, 1), lambda i: (0, 0)),       # fused head biases
    ]
    out_specs = (
        pl.BlockSpec((a_head, tile_b), lambda i: (0, i)),      # action   (lane-dense)
        pl.BlockSpec((1, tile_b), lambda i: (0, i)),           # logprob  (lane-dense)
    )

    flops = 2 * b_pad * (d_in * hidden + hidden * hidden + hidden * 2 * a_head)
    transcendentals = 4 * b_pad * a_head    # exp(logstd) + tanh + softplus(exp+log)
    bytes_accessed = (w1t.size * 2 + w2t.size * 2 + wht.size * 4
                      + (b1c.size + b2c.size + bhc.size) * 4
                      + b_pad * d_in * 2 + b_pad * a_head * 4   # state(bf16) + eps in
                      + b_pad * (a_head + 1) * 4)               # action + logprob out
    cost = pl.CostEstimate(flops=flops, transcendentals=transcendentals,
                           bytes_accessed=bytes_accessed)

    action_t, logprob_t = pl.pallas_call(
        functools.partial(policy_kernel, n_actions=A, a_head=a_head),
        out_shape=(jax.ShapeDtypeStruct((a_head, b_pad), jnp.float32),
                   jax.ShapeDtypeStruct((1, b_pad), jnp.float32)),
        grid=grid,
        in_specs=in_specs,
        out_specs=out_specs,
        compiler_params=pltpu.CompilerParams(
            dimension_semantics=("parallel",)),   # only an actual lever on v7x (2 TCs)
        cost_estimate=cost,
    )(state_t, eps_t, w1t, b1c, w2t, b2c, wht, bhc)

    # Back to the PyTorch convention: action [B, A], logprob [B, 1].
    return action_t[:A, :B].T, logprob_t[:, :B].T


def init_params(key, input_dims, n_actions, hidden=256):
    """Deterministic init mimicking PyTorch nn.Linear default (U(-k, k), k=1/sqrt(fan_in)).
    Weights stored [in, out] (transpose of nn.Linear) so forward is x @ W + b."""
    def linear(key, fan_in, fan_out):
        kw, kb = jax.random.split(key)
        k = 1.0 / jnp.sqrt(jnp.float32(fan_in))
        w = jax.random.uniform(kw, (fan_in, fan_out), jnp.float32, -k, k)
        b = jax.random.uniform(kb, (1, fan_out), jnp.float32, -k, k)
        return w, b

    k1, k2, k3, k4 = jax.random.split(key, 4)
    w1, b1 = linear(k1, input_dims, hidden)
    w2, b2 = linear(k2, hidden, hidden)
    wmu, bmu = linear(k3, hidden, n_actions)
    wls, bls = linear(k4, hidden, n_actions)
    return {"w1": w1, "b1": b1, "w2": w2, "b2": b2,
            "wmu": wmu, "bmu": bmu, "wls": wls, "bls": bls}


def reference_forward(state, eps, params):
    """Pure-JAX f32 reference of the PyTorch forward (sanity check)."""
    h1 = jnp.maximum(state @ params["w1"] + params["b1"], 0.0)
    h2 = jnp.maximum(h1 @ params["w2"] + params["b2"], 0.0)
    mu = h2 @ params["wmu"] + params["bmu"]
    logstd = jnp.clip(h2 @ params["wls"] + params["bls"], -20.0, 2.0)
    std = jnp.exp(logstd)
    z = mu + std * eps
    action = jnp.tanh(z)
    base_lp = -0.5 * eps * eps - logstd - 0.5 * jnp.log(2.0 * jnp.pi)
    log_det = 2.0 * (jnp.log(2.0) - z - jax.nn.softplus(-2.0 * z))
    logprob = jnp.sum(base_lp - log_det, axis=-1, keepdims=True)
    return action, logprob


if __name__ == "__main__":
    B, INPUT_DIMS, N_ACTIONS = 2, 16, 4

    root = jax.random.PRNGKey(0)
    k_params, k_state, k_eps = jax.random.split(root, 3)

    params = init_params(k_params, INPUT_DIMS, N_ACTIONS)
    state = jax.random.normal(k_state, (B, INPUT_DIMS), jnp.float32)
    eps = jax.random.normal(k_eps, (B, N_ACTIONS), jnp.float32)  # rsample noise

    action, logprob = policy_forward(state, eps, params)
    jax.block_until_ready((action, logprob))

    # Shape / sanity checks.
    assert action.shape == (B, N_ACTIONS) and logprob.shape == (B, 1)
    assert bool(jnp.all(jnp.isfinite(action))) and bool(jnp.all(jnp.isfinite(logprob)))
    assert bool(jnp.all(jnp.abs(action) <= 1.0))  # tanh-squashed actions

    # Agreement with the f32 reference (bf16 MXU operands in layers 1/2 only;
    # head matmul is f32, so the drift is small).
    ref_action, ref_logprob = reference_forward(state, eps, params)
    assert bool(jnp.allclose(action, ref_action, atol=1e-1, rtol=5e-2))
    assert bool(jnp.allclose(logprob, ref_logprob, atol=5e-1, rtol=1e-1))

    print("KERNEL_OK")
</pallas_src>

<mosaic_0001>
module attributes {stable_mosaic.version = 11 : i64} {
  func.func @policy_kernel(%arg0: i32, %arg1: memref<16x128xbf16, #tpu.memory_space<vmem>>, %arg2: memref<8x128xf32, #tpu.memory_space<vmem>>, %arg3: memref<256x16xbf16, #tpu.memory_space<vmem>>, %arg4: memref<256x1xf32, #tpu.memory_space<vmem>>, %arg5: memref<256x256xbf16, #tpu.memory_space<vmem>>, %arg6: memref<256x1xf32, #tpu.memory_space<vmem>>, %arg7: memref<16x256xf32, #tpu.memory_space<vmem>>, %arg8: memref<16x1xf32, #tpu.memory_space<vmem>>, %arg9: memref<8x128xf32, #tpu.memory_space<vmem>>, %arg10: memref<1x128xf32, #tpu.memory_space<vmem>>) attributes {dimension_semantics = [#tpu.dimension_semantics<parallel>], iteration_bounds = array<i64: 1>, scalar_prefetch = 0 : i64, scratch_operands = 0 : i64, tpu.core_type = #tpu.core_type<tc>, window_params = [{transform_indices = @transform_0, window_bounds = array<i64: 16, 128>}, {transform_indices = @transform_1, window_bounds = array<i64: 8, 128>}, {pipeline_mode = #tpu.pipeline_mode<synchronous>, transform_indices = @transform_2, window_bounds = array<i64: 256, 16>}, {pipeline_mode = #tpu.pipeline_mode<synchronous>, transform_indices = @transform_3, window_bounds = array<i64: 256, 1>}, {pipeline_mode = #tpu.pipeline_mode<synchronous>, transform_indices = @transform_4, window_bounds = array<i64: 256, 256>}, {pipeline_mode = #tpu.pipeline_mode<synchronous>, transform_indices = @transform_5, window_bounds = array<i64: 256, 1>}, {pipeline_mode = #tpu.pipeline_mode<synchronous>, transform_indices = @transform_6, window_bounds = array<i64: 16, 256>}, {pipeline_mode = #tpu.pipeline_mode<synchronous>, transform_indices = @transform_7, window_bounds = array<i64: 16, 1>}, {transform_indices = @transform_8, window_bounds = array<i64: 8, 128>}, {transform_indices = @transform_9, window_bounds = array<i64: 1, 128>}]} {
    %c0 = arith.constant 0 : index
    %c0_0 = arith.constant 0 : index
    %0 = vector.load %arg1[%c0, %c0_0] : memref<16x128xbf16, #tpu.memory_space<vmem>>, vector<16x128xbf16>
    %c0_1 = arith.constant 0 : index
    %c0_2 = arith.constant 0 : index
    %1 = vector.load %arg3[%c0_1, %c0_2] : memref<256x16xbf16, #tpu.memory_space<vmem>>, vector<256x16xbf16>
    %cst = arith.constant dense<0.000000e+00> : vector<256x128xf32>
    %2 = tpu.matmul %1, %0, %cst {dimension_numbers = #tpu.dot_dimension_numbers<[1], [0], [0], [1], [0, 0, 1, 1], [], []>} : vector<256x16xbf16>, vector<16x128xbf16>, vector<256x128xf32> -> vector<256x128xf32>
    %c0_3 = arith.constant 0 : index
    %c0_4 = arith.constant 0 : index
    %3 = vector.load %arg4[%c0_3, %c0_4] : memref<256x1xf32, #tpu.memory_space<vmem>>, vector<256x1xf32>
    %4 = vector.broadcast %3 : vector<256x1xf32> to vector<256x128xf32>
    %5 = arith.addf %2, %4 : vector<256x128xf32>
    %cst_5 = arith.constant 0.000000e+00 : f32
    %6 = vector.broadcast %cst_5 : f32 to vector<256x128xf32>
    %7 = arith.maximumf %5, %6 : vector<256x128xf32>
    %8 = arith.truncf %7 : vector<256x128xf32> to vector<256x128xbf16>
    %c0_6 = arith.constant 0 : index
    %c0_7 = arith.constant 0 : index
    %9 = vector.load %arg5[%c0_6, %c0_7] : memref<256x256xbf16, #tpu.memory_space<vmem>>, vector<256x256xbf16>
    %cst_8 = arith.constant dense<0.000000e+00> : vector<256x128xf32>
    %10 = tpu.matmul %9, %8, %cst_8 {dimension_numbers = #tpu.dot_dimension_numbers<[1], [0], [0], [1], [0, 0, 1, 1], [], []>} : vector<256x256xbf16>, vector<256x128xbf16>, vector<256x128xf32> -> vector<256x128xf32>
    %c0_9 = arith.constant 0 : index
    %c0_10 = arith.constant 0 : index
    %11 = vector.load %arg6[%c0_9, %c0_10] : memref<256x1xf32, #tpu.memory_space<vmem>>, vector<256x1xf32>
    %12 = vector.broadcast %11 : vector<256x1xf32> to vector<256x128xf32>
    %13 = arith.addf %10, %12 : vector<256x128xf32>
    %cst_11 = arith.constant 0.000000e+00 : f32
    %14 = vector.broadcast %cst_11 : f32 to vector<256x128xf32>
    %15 = arith.maximumf %13, %14 : vector<256x128xf32>
    %c0_12 = arith.constant 0 : index
    %c0_13 = arith.constant 0 : index
    %16 = vector.load %arg7[%c0_12, %c0_13] : memref<16x256xf32, #tpu.memory_space<vmem>>, vector<16x256xf32>
    %cst_14 = arith.constant dense<0.000000e+00> : vector<16x128xf32>
    %17 = tpu.matmul %16, %15, %cst_14 {dimension_numbers = #tpu.dot_dimension_numbers<[1], [0], [0], [1], [0, 0, 1, 1], [], []>} : vector<16x256xf32>, vector<256x128xf32>, vector<16x128xf32> -> vector<16x128xf32>
    %c0_15 = arith.constant 0 : index
    %c0_16 = arith.constant 0 : index
    %18 = vector.load %arg8[%c0_15, %c0_16] : memref<16x1xf32, #tpu.memory_space<vmem>>, vector<16x1xf32>
    %19 = vector.broadcast %18 : vector<16x1xf32> to vector<16x128xf32>
    %20 = arith.addf %17, %19 : vector<16x128xf32>
    %21 = vector.extract_strided_slice %20 {offsets = [0, 0], sizes = [8, 128], strides = [1, 1]} : vector<16x128xf32> to vector<8x128xf32>
    %22 = vector.extract_strided_slice %20 {offsets = [8, 0], sizes = [8, 128], strides = [1, 1]} : vector<16x128xf32> to vector<8x128xf32>
    %cst_17 = arith.constant -2.000000e+01 : f32
    %cst_18 = arith.constant 2.000000e+00 : f32
    %23 = vector.broadcast %cst_17 : f32 to vector<8x128xf32>
    %24 = arith.maximumf %23, %22 : vector<8x128xf32>
    %25 = vector.broadcast %cst_18 : f32 to vector<8x128xf32>
    %26 = arith.minimumf %25, %24 : vector<8x128xf32>
    %27 = math.exp %26 : vector<8x128xf32>
    %c0_19 = arith.constant 0 : index
    %c0_20 = arith.constant 0 : index
    %28 = vector.load %arg2[%c0_19, %c0_20] : memref<8x128xf32, #tpu.memory_space<vmem>>, vector<8x128xf32>
    %29 = arith.mulf %27, %28 : vector<8x128xf32>
    %30 = arith.addf %21, %29 : vector<8x128xf32>
    %31 = math.tanh %30 : vector<8x128xf32>
    %c0_21 = arith.constant 0 : index
    %c0_22 = arith.constant 0 : index
    %32 = vector.load %arg9[%c0_21, %c0_22] : memref<8x128xf32, #tpu.memory_space<vmem>>, vector<8x128xf32>
    tpu.vector_store %arg9[%c0_21, %c0_22], %31 {strides = array<i32>} : memref<8x128xf32, #tpu.memory_space<vmem>>, vector<8x128xf32>,
    %cst_23 = arith.constant 2.000000e+00 : f32
    %33 = math.log %cst_23 : f32
    %34 = vector.broadcast %33 : f32 to vector<8x128xf32>
    %35 = arith.subf %34, %30 : vector<8x128xf32>
    %cst_24 = arith.constant -2.000000e+00 : f32
    %36 = vector.broadcast %cst_24 : f32 to vector<8x128xf32>
    %37 = arith.mulf %36, %30 : vector<8x128xf32>
    %cst_25 = arith.constant 0.000000e+00 : f32
    %38 = vector.broadcast %cst_25 : f32 to vector<8x128xf32>
    %39 = arith.maximumf %37, %38 : vector<8x128xf32>
    %40 = vector.broadcast %cst_25 : f32 to vector<8x128xf32>
    %41 = arith.subf %37, %40 : vector<8x128xf32>
    %42 = arith.cmpf one, %41, %41 : vector<8x128xf32>
    %43 = vector.broadcast %cst_25 : f32 to vector<8x128xf32>
    %44 = arith.addf %37, %43 : vector<8x128xf32>
    %45 = math.absf %41 : vector<8x128xf32>
    %cst_26 = arith.constant 0.000000e+00 : f32
    %46 = vector.broadcast %cst_26 : f32 to vector<8x128xf32>
    %47 = arith.subf %46, %45 : vector<8x128xf32>
    %48 = math.exp %47 : vector<8x128xf32>
    %49 = math.log1p %48 : vector<8x128xf32>
    %50 = arith.addf %39, %49 : vector<8x128xf32>
    %51 = arith.select %42, %44, %50 : vector<8x128xi1>, vector<8x128xf32>
    %52 = arith.subf %35, %51 : vector<8x128xf32>
    %cst_27 = arith.constant 2.000000e+00 : f32
    %53 = vector.broadcast %cst_27 : f32 to vector<8x128xf32>
    %54 = arith.mulf %53, %52 : vector<8x128xf32>
    %cst_28 = arith.constant -5.000000e-01 : f32
    %55 = vector.broadcast %cst_28 : f32 to vector<8x128xf32>
    %56 = arith.mulf %55, %28 : vector<8x128xf32>
    %57 = arith.mulf %56, %28 : vector<8x128xf32>
    %58 = arith.subf %57, %26 : vector<8x128xf32>
    %59 = arith.subf %58, %54 : vector<8x128xf32>
    %cst_29 = arith.constant dense<0.000000e+00> : vector<128xf32>
    %60 = vector.multi_reduction <add>, %59, %cst_29 [0] : vector<8x128xf32> to vector<128xf32>
    %61 = vector.shape_cast %60 : vector<128xf32> to vector<1x128xf32>
    %cst_30 = arith.constant 6.28318548 : f32
    %62 = math.log %cst_30 : f32
    %cst_31 = arith.constant 2.000000e+00 : f32
    %63 = arith.mulf %cst_31, %62 : f32
    %64 = vector.broadcast %63 : f32 to vector<1x128xf32>
    %65 = arith.subf %61, %64 : vector<1x128xf32>
    %c0_32 = arith.constant 0 : index
    %c0_33 = arith.constant 0 : index
    %66 = vector.load %arg10[%c0_32, %c0_33] : memref<1x128xf32, #tpu.memory_space<vmem>>, vector<1x128xf32>
    tpu.vector_store %arg10[%c0_32, %c0_33], %65 {strides = array<i32>} : memref<1x128xf32, #tpu.memory_space<vmem>>, vector<1x128xf32>,
    return
  }
  func.func @transform_0(%arg0: i32) -> (i32, i32) {
    %c0_i32 = arith.constant 0 : i32
    %c0_i32_0 = arith.constant 0 : i32
    return %c0_i32, %arg0 : i32, i32
  }
  func.func @transform_1(%arg0: i32) -> (i32, i32) {
    %c0_i32 = arith.constant 0 : i32
    %c0_i32_0 = arith.constant 0 : i32
    return %c0_i32, %arg0 : i32, i32
  }
  func.func @transform_2(%arg0: i32) -> (i32, i32) {
    %c0_i32 = arith.constant 0 : i32
    %c0_i32_0 = arith.constant 0 : i32
    %c0_i32_1 = arith.constant 0 : i32
    return %c0_i32, %c0_i32_0 : i32, i32
  }
  func.func @transform_3(%arg0: i32) -> (i32, i32) {
    %c0_i32 = arith.constant 0 : i32
    %c0_i32_0 = arith.constant 0 : i32
    %c0_i32_1 = arith.constant 0 : i32
    return %c0_i32, %c0_i32_0 : i32, i32
  }
  func.func @transform_4(%arg0: i32) -> (i32, i32) {
    %c0_i32 = arith.constant 0 : i32
    %c0_i32_0 = arith.constant 0 : i32
    %c0_i32_1 = arith.constant 0 : i32
    return %c0_i32, %c0_i32_0 : i32, i32
  }
  func.func @transform_5(%arg0: i32) -> (i32, i32) {
    %c0_i32 = arith.constant 0 : i32
    %c0_i32_0 = arith.constant 0 : i32
    %c0_i32_1 = arith.constant 0 : i32
    return %c0_i32, %c0_i32_0 : i32, i32
  }
  func.func @transform_6(%arg0: i32) -> (i32, i32) {
    %c0_i32 = arith.constant 0 : i32
    %c0_i32_0 = arith.constant 0 : i32
    %c0_i32_1 = arith.constant 0 : i32
    return %c0_i32, %c0_i32_0 : i32, i32
  }
  func.func @transform_7(%arg0: i32) -> (i32, i32) {
    %c0_i32 = arith.constant 0 : i32
    %c0_i32_0 = arith.constant 0 : i32
    %c0_i32_1 = arith.constant 0 : i32
    return %c0_i32, %c0_i32_0 : i32, i32
  }
  func.func @transform_8(%arg0: i32) -> (i32, i32) {
    %c0_i32 = arith.constant 0 : i32
    %c0_i32_0 = arith.constant 0 : i32
    return %c0_i32, %arg0 : i32, i32
  }
  func.func @transform_9(%arg0: i32) -> (i32, i32) {
    %c0_i32 = arith.constant 0 : i32
    %c0_i32_0 = arith.constant 0 : i32
    return %c0_i32, %arg0 : i32, i32
  }
}

</mosaic_0001>

<bundles_post_ra>
// kernel: tpu_custom_call.1
= control target key start
LH: loop header
LB: loop body
LE: loop exit
PB: predicated region body
PF: predicated region fallthrough
CT: control target
= control target key end

     0   :  { %15 = vsyncpa [#allocation3], 0  ;;  %v1784_v2 = vmov 0   ;;  %vm346_vm0 = vcmask 130048   ;;  %s2401_s0 = inlined_call_operand.vmem [shape: bf16[16,128], index: 0, kind: input, shape index: {}]   ;;  %s2402_s1 = inlined_call_operand.vmem [shape: f32[8,128], index: 1, kind: input, shape index: {}]   ;;  %s2403_s2 = inlined_call_operand.vmem [shape: bf16[256,16], index: 2, kind: input, shape index: {}]   ;;  %s2404_s3 = inlined_call_operand.vmem [shape: f32[256,1], index: 3, kind: input, shape index: {}]   ;;  %s2405_s4 = inlined_call_operand.vmem [shape: bf16[256,256], index: 4, kind: input, shape index: {}]   ;;  %s2406_s5 = inlined_call_operand.vmem [shape: f32[256,1], index: 5, kind: input, shape index: {}]   ;;  %s2407_s6 = inlined_call_operand.vmem [shape: f32[16,256], index: 6, kind: input, shape index: {}]   ;;  %s2408_s7 = inlined_call_operand.vmem [shape: f32[16,1], index: 7, kind: input, shape index: {}]   ;;  %s2409_s8 = inlined_call_operand.hbm [shape: f32[8,128], index: 8, kind: output, shape index: {0}]   ;;  %s2410_s9 = inlined_call_operand.hbm [shape: f32[1,128], index: 9, kind: output, shape index: {1}]  }
   0x1   :  { %v84_v0 = vld [vmem:[%s2404_s3 + $0x80] sm:$0xff]  ;;  %1662 = vset.pattern.permute.xlu1 %v1784_v2  ;;  %1661 = vset.pattern.permute.xlu0 %v1784_v2  ;;  %v85_v4 = vld [vmem:[%s2404_s3 + $0x88] sm:$0xff]  ;;  %v1666_v8 = vld [vmem:[%s2403_s2 + $0x10] sm:$0xff]  }
   0x2   :  { %v68_v1 = vld [vmem:[%s2404_s3] sm:$0xff]  ;;  %182 = vperm.xlu0 %1661, %v84_v0   ;;  %v69_v5 = vld [vmem:[%s2404_s3 + $0x8] sm:$0xff]  ;;  %v86_v9 = vld [vmem:[%s2404_s3 + $0x90] sm:$0xff] }
   0x3   :  { %v1663_v3 = vld [vmem:[%s2401_s0] sm:$0xff]   ;;  %102 = vperm.xlu1 %1662, %v68_v1   ;;  %v1665_v7 = vld [vmem:[%s2403_s2 + $0x8] sm:$0xff]   ;;  %v87_v10 = vld [vmem:[%s2404_s3 + $0x98] sm:$0xff] }
   0x4   :  { %1576 = vmatprep.subr.bf16.mxu0 %v1663_v3  ;;  %v1664_v6 = vld [vmem:[%s2403_s2] sm:$0xff]   ;;  %v70_v11 = vld [vmem:[%s2404_s3 + $0x10] sm:$0xff]  ;;  %v71_v12 = vld [vmem:[%s2404_s3 + $0x18] sm:$0xff] }
   0x5   :  { %1577 = vmatpush3.bf16.msra.mxu0 %v1663_v3  ;;  %1578 = vmatprep.mubr.msk.bf16.mxu0 %vm346_vm0, %v1664_v6  ;;  %v1667_v13 = vld [vmem:[%s2403_s2 + $0x18] sm:$0xff]   ;;  %v1668_v14 = vld [vmem:[%s2403_s2 + $0x20] sm:$0xff]   ;;  %v89_v16 = vld [vmem:[%s2404_s3 + $0xa8] sm:$0xff] }
   0x6   :  { %187 = vperm.xlu0 %1661, %v85_v4   ;;  %v88_v15 = vld [vmem:[%s2404_s3 + $0xa0] sm:$0xff]  ;;  %v73_v18 = vld [vmem:[%s2404_s3 + $0x28] sm:$0xff]  ;;  %v1670_v20 = vld [vmem:[%s2403_s2 + $0x30] sm:$0xff]  }
   0x7   :  { %107 = vperm.xlu1 %1662, %v69_v5   ;;  %v72_v17 = vld [vmem:[%s2404_s3 + $0x20] sm:$0xff]  ;;  %v1669_v19 = vld [vmem:[%s2403_s2 + $0x28] sm:$0xff]   ;;  %v90_v21 = vld [vmem:[%s2404_s3 + $0xb0] sm:$0xff] }
   0x8   :  { %1579 = vmatmul.mubr.msk.bf16.vlgmr.msra.gmra.mrb[0].mxu0 %vm346_vm0, %v1665_v7  ;;  %v91_v22 = vld [vmem:[%s2404_s3 + $0xb8] sm:$0xff]  ;;  %v74_v23 = vld [vmem:[%s2404_s3 + $0x30] sm:$0xff]  ;;  %v1672_v26 = vld [vmem:[%s2403_s2 + $0x40] sm:$0xff]  }
   0x9   :  { %1582 = vmatprep.mubr.msk.bf16.mxu0 %vm346_vm0, %v1666_v8  ;;  %v75_v24 = vld [vmem:[%s2404_s3 + $0x38] sm:$0xff]  ;;  %v92_v27 = vld [vmem:[%s2404_s3 + $0xc0] sm:$0xff]  ;;  %v93_v28 = vld [vmem:[%s2404_s3 + $0xc8] sm:$0xff] }
   0xa   :  { %192 = vperm.xlu0 %1661, %v86_v9   ;;  %v1671_v25 = vld [vmem:[%s2403_s2 + $0x38] sm:$0xff]   ;;  %v76_v29 = vld [vmem:[%s2404_s3 + $0x40] sm:$0xff]  ;;  %v77_v30 = vld [vmem:[%s2404_s3 + $0x48] sm:$0xff] }
   0xb   :  { %197 = vperm.xlu1 %1662, %v87_v10   ;;  %v1673_v31 = vld [vmem:[%s2403_s2 + $0x48] sm:$0xff]   ;;  %v1674_v32 = vld [vmem:[%s2403_s2 + $0x50] sm:$0xff]   ;;  %v95_v34 = vld [vmem:[%s2404_s3 + $0xd8] sm:$0xff] }
   0xc   :  { %v94_v33 = vld [vmem:[%s2404_s3 + $0xd0] sm:$0xff]  ;;  %v79_v36 = vld [vmem:[%s2404_s3 + $0x58] sm:$0xff]  ;;  %v1676_v38 = vld [vmem:[%s2403_s2 + $0x60] sm:$0xff]  }
   0xd   :  { %v78_v35 = vld [vmem:[%s2404_s3 + $0x50] sm:$0xff]  ;;  %v1675_v37 = vld [vmem:[%s2403_s2 + $0x58] sm:$0xff]   ;;  %v96_v39 = vld [vmem:[%s2404_s3 + $0xe0] sm:$0xff] }
   0xe   :  { %112 = vperm.xlu0 %1661, %v70_v11   ;;  %v97_v40 = vld [vmem:[%s2404_s3 + $0xe8] sm:$0xff] }
   0xf   :  { %117 = vperm.xlu1 %1662, %v71_v12  }
  0x10   :  { %1583 = vmatmul.mubr.msk.bf16.gmra.mrb[4].mxu0 %vm346_vm0, %v1667_v13 }
  0x11   :  { %1586 = vmatprep.mubr.msk.bf16.mxu0 %vm346_vm0, %v1668_v14 }
  0x12   :  { %202 = vperm.xlu0 %1661, %v88_v15  }
  0x13   :  { %207 = vperm.xlu1 %1662, %v89_v16  }
  0x16   :  { %122 = vperm.xlu0 %1661, %v72_v17  }
  0x17   :  { %127 = vperm.xlu1 %1662, %v73_v18  }
  0x18   :  { %1587 = vmatmul.mubr.msk.bf16.gmra.mrb[8].mxu0 %vm346_vm0, %v1669_v19 }
  0x19   :  { %1590 = vmatprep.mubr.msk.bf16.mxu0 %vm346_vm0, %v1670_v20 }
  0x1a   :  { %212 = vperm.xlu0 %1661, %v90_v21  }
  0x1b   :  { %217 = vperm.xlu1 %1662, %v91_v22  }
  0x1e   :  { %132 = vperm.xlu0 %1661, %v74_v23  }
  0x1f   :  { %137 = vperm.xlu1 %1662, %v75_v24  }
  0x20   :  { %1591 = vmatmul.mubr.msk.bf16.gmra.mrb[12].mxu0 %vm346_vm0, %v1671_v25 }
  0x21   :  { %1594 = vmatprep.mubr.msk.bf16.mxu0 %vm346_vm0, %v1672_v26 }
  0x22   :  { %222 = vperm.xlu0 %1661, %v92_v27  }
  0x23   :  { %227 = vperm.xlu1 %1662, %v93_v28  }
  0x26   :  { %142 = vperm.xlu0 %1661, %v76_v29  }
  0x27   :  { %147 = vperm.xlu1 %1662, %v77_v30  }
  0x28   :  { %1595 = vmatmul.mubr.msk.bf16.gmra.mrb[16].mxu0 %vm346_vm0, %v1673_v31 }
  0x29   :  { %1598 = vmatprep.mubr.msk.bf16.mxu0 %vm346_vm0, %v1674_v32 }
  0x2a   :  { %232 = vperm.xlu0 %1661, %v94_v33  }
  0x2b   :  { %237 = vperm.xlu1 %1662, %v95_v34  }
  0x2e   :  { %152 = vperm.xlu0 %1661, %v78_v35  }
  0x2f   :  { %157 = vperm.xlu1 %1662, %v79_v36  }
  0x30   :  { %1599 = vmatmul.mubr.msk.bf16.gmra.mrb[20].mxu0 %vm346_vm0, %v1675_v37 }
  0x31   :  { %1602 = vmatprep.mubr.msk.bf16.mxu0 %vm346_vm0, %v1676_v38 }
  0x32   :  { %16 = vsyncpa [#allocation5], 0  ;;  %242 = vperm.xlu0 %1661, %v96_v39   ;;  %v80_v41 = vld [vmem:[%s2404_s3 + $0x60] sm:$0xff]  ;;  %v81_v42 = vld [vmem:[%s2404_s3 + $0x68] sm:$0xff] }
  0x33   :  { %247 = vperm.xlu1 %1662, %v97_v40   ;;  %v1677_v43 = vld [vmem:[%s2403_s2 + $0x68] sm:$0xff]   ;;  %v1678_v44 = vld [vmem:[%s2403_s2 + $0x70] sm:$0xff]   ;;  %v99_v46 = vld [vmem:[%s2404_s3 + $0xf8] sm:$0xff] }
  0x34   :  { %v98_v45 = vld [vmem:[%s2404_s3 + $0xf0] sm:$0xff]  ;;  %v83_v48 = vld [vmem:[%s2404_s3 + $0x78] sm:$0xff]  ;;  %v652_v50 = vld [vmem:[%s2406_s5 + $0x80] sm:$0xff] }
  0x35   :  { %v82_v47 = vld [vmem:[%s2404_s3 + $0x70] sm:$0xff]  ;;  %v1679_v49 = vld [vmem:[%s2403_s2 + $0x78] sm:$0xff]   ;;  %v653_v51 = vld [vmem:[%s2406_s5 + $0x88] sm:$0xff] }
  0x36   :  { %162 = vperm.xlu0 %1661, %v80_v41   ;;  %v636_v52 = vld [vmem:[%s2406_s5] sm:$0xff]  ;;  %v637_v53 = vld [vmem:[%s2406_s5 + $0x8] sm:$0xff]  ;;  %v654_v54 = vld [vmem:[%s2406_s5 + $0x90] sm:$0xff] }
  0x37   :  { %167 = vperm.xlu1 %1662, %v81_v42   ;;  %v655_v55 = vld [vmem:[%s2406_s5 + $0x98] sm:$0xff]  ;;  %v638_v56 = vld [vmem:[%s2406_s5 + $0x10] sm:$0xff]  ;;  %v656_v58 = vld [vmem:[%s2406_s5 + $0xa0] sm:$0xff] }
  0x38   :  { %1603 = vmatmul.mubr.msk.bf16.gmra.mrb[24].mxu0 %vm346_vm0, %v1677_v43  ;;  %v639_v57 = vld [vmem:[%s2406_s5 + $0x18] sm:$0xff]  ;;  %v657_v59 = vld [vmem:[%s2406_s5 + $0xa8] sm:$0xff]  ;;  %v640_v60 = vld [vmem:[%s2406_s5 + $0x20] sm:$0xff] }
  0x39   :  { %1606 = vmatprep.mubr.msk.bf16.mxu0 %vm346_vm0, %v1678_v44  ;;  %v641_v61 = vld [vmem:[%s2406_s5 + $0x28] sm:$0xff]  ;;  %v658_v62 = vld [vmem:[%s2406_s5 + $0xb0] sm:$0xff]  ;;  %v659_v63 = vld [vmem:[%s2406_s5 + $0xb8] sm:$0xff] }
  0x3a   :  { %252 = vperm.xlu0 %1661, %v98_v45   ;;  %v642_v0 = vld [vmem:[%s2406_s5 + $0x30] sm:$0xff]  ;;  %v643_v1 = vld [vmem:[%s2406_s5 + $0x38] sm:$0xff]  ;;  %v660_v2 = vld [vmem:[%s2406_s5 + $0xc0] sm:$0xff] }
  0x3b   :  { %257 = vperm.xlu1 %1662, %v99_v46   ;;  %v661_v3 = vld [vmem:[%s2406_s5 + $0xc8] sm:$0xff]  ;;  %v644_v4 = vld [vmem:[%s2406_s5 + $0x40] sm:$0xff]  ;;  %v662_v6 = vld [vmem:[%s2406_s5 + $0xd0] sm:$0xff] }
  0x3c   :  { %v645_v5 = vld [vmem:[%s2406_s5 + $0x48] sm:$0xff]  ;;  %v663_v7 = vld [vmem:[%s2406_s5 + $0xd8] sm:$0xff]  ;;  %v646_v8 = vld [vmem:[%s2406_s5 + $0x50] sm:$0xff] }
  0x3d   :  { %v647_v9 = vld [vmem:[%s2406_s5 + $0x58] sm:$0xff]  ;;  %v664_v10 = vld [vmem:[%s2406_s5 + $0xe0] sm:$0xff]  ;;  %v665_v11 = vld [vmem:[%s2406_s5 + $0xe8] sm:$0xff] }
  0x3e   :  { %172 = vperm.xlu0 %1661, %v82_v47   ;;  %v648_v12 = vld [vmem:[%s2406_s5 + $0x60] sm:$0xff]  ;;  %v649_v13 = vld [vmem:[%s2406_s5 + $0x68] sm:$0xff]  ;;  %v666_v14 = vld [vmem:[%s2406_s5 + $0xf0] sm:$0xff] }
  0x3f   :  { %177 = vperm.xlu1 %1662, %v83_v48   ;;  %v667_v15 = vld [vmem:[%s2406_s5 + $0xf8] sm:$0xff]  ;;  %v650_v16 = vld [vmem:[%s2406_s5 + $0x70] sm:$0xff]  ;;  %v1186_v18 = vld [vmem:[%s2408_s7 + $0x8] sm:$0xff] }
  0x40   :  { %1607 = vmatmul.mubr.msk.bf16.gmra.mrb[28].mxu0 %vm346_vm0, %v1679_v49  ;;  %v651_v17 = vld [vmem:[%s2406_s5 + $0x78] sm:$0xff]  ;;  %v1185_v19 = vld [vmem:[%s2408_s7] sm:$0xff] }
  0x41   :  { %v1682_v24 = vld [vmem:[%s2405_s4 + $0x4] ss:$8 sps:$4 sm:$0xff]   ;;  %v1685_v25 = vld [vmem:[%s2405_s4 + $0x54] ss:$8 sps:$4 sm:$0xff]  }
  0x42   :  { %750 = vperm.xlu0 %1661, %v652_v50   ;;  %1020 = vmatprep.mubr.bf16.mxu0 %v1682_v24 }
  0x43   :  { %755 = vperm.xlu1 %1662, %v653_v51   ;;  %1060 = vmatprep.mubr.bf16.mxu1 %v1685_v25 }
  0x46   :  { %670 = vperm.xlu0 %1661, %v636_v52  }
  0x47   :  { %675 = vperm.xlu1 %1662, %v637_v53  }
  0x4a   :  { %760 = vperm.xlu0 %1661, %v654_v54  }
  0x4b   :  { %765 = vperm.xlu1 %1662, %v655_v55  }
  0x4e   :  { %680 = vperm.xlu0 %1661, %v638_v56  }
  0x4f   :  { %685 = vperm.xlu1 %1662, %v639_v57  }
  0x52   :  { %770 = vperm.xlu0 %1661, %v656_v58  }
  0x53   :  { %775 = vperm.xlu1 %1662, %v657_v59  }
  0x56   :  { %690 = vperm.xlu0 %1661, %v640_v60  }
  0x57   :  { %695 = vperm.xlu1 %1662, %v641_v61  }
  0x5a   :  { %780 = vperm.xlu0 %1661, %v658_v62  }
  0x5b   :  { %785 = vperm.xlu1 %1662, %v659_v63  }
  0x5e   :  { %700 = vperm.xlu0 %1661, %v642_v0  }
  0x5f   :  { %705 = vperm.xlu1 %1662, %v643_v1  }
  0x62   :  { %790 = vperm.xlu0 %1661, %v660_v2  }
  0x63   :  { %795 = vperm.xlu1 %1662, %v661_v3  }
  0x66   :  { %710 = vperm.xlu0 %1661, %v644_v4  }
  0x67   :  { %715 = vperm.xlu1 %1662, %v645_v5  }
  0x6a   :  { %800 = vperm.xlu0 %1661, %v662_v6  }
  0x6b   :  { %805 = vperm.xlu1 %1662, %v663_v7  }
  0x6e   :  { %720 = vperm.xlu0 %1661, %v646_v8  }
  0x6f   :  { %725 = vperm.xlu1 %1662, %v647_v9  }
  0x72   :  { %810 = vperm.xlu0 %1661, %v664_v10  }
  0x73   :  { %815 = vperm.xlu1 %1662, %v665_v11  }
  0x76   :  { %730 = vperm.xlu0 %1661, %v648_v12  }
  0x77   :  { %735 = vperm.xlu1 %1662, %v649_v13  }
  0x7a   :  { %820 = vperm.xlu0 %1661, %v666_v14  }
  0x7b   :  { %825 = vperm.xlu1 %1662, %v667_v15  }
  0x7e   :  { %740 = vperm.xlu0 %1661, %v650_v16  }
  0x7f   :  { %745 = vperm.xlu1 %1662, %v651_v17  }
  0x81   :  { %v2102_v20 = vpop.permute.xlu0 %182 }
  0x82   :  { %1194 = vperm.xlu0 %1661, %v1186_v18   ;;  %v103_v21 = vpop.permute.xlu1 %102 }
  0x83   :  { %1189 = vperm.xlu1 %1662, %v1185_v19  }
  0x85   :  { %v2104_v22 = vpop.permute.xlu0 %187 }
  0x86   :  { %v108_v23 = vpop.permute.xlu1 %107 }
  0x89   :  { %v2112_v26 = vpop.permute.xlu0 %192 }
  0x8a   :  { %v2114_v27 = vpop.permute.xlu1 %197 }
  0x8d   :  { %v113_v28 = vpop.permute.xlu0 %112 }
  0x8e   :  { %v118_v29 = vpop.permute.xlu1 %117 }
  0x91   :  { %v2116_v30 = vpop.permute.xlu0 %202 }
  0x92   :  { %v2118_v31 = vpop.permute.xlu1 %207 }
  0x95   :  { %v123_v32 = vpop.permute.xlu0 %122 }
  0x96   :  { %v128_v33 = vpop.permute.xlu1 %127 }
  0x99   :  { %v2120_v34 = vpop.permute.xlu0 %212 }
  0x9a   :  { %v2122_v35 = vpop.permute.xlu1 %217 }
  0x9d   :  { %v133_v36 = vpop.permute.xlu0 %132 }
  0x9e   :  { %v138_v37 = vpop.permute.xlu1 %137 }
  0xa1   :  { %v2124_v38 = vpop.permute.xlu0 %222 }
  0xa2   :  { %v2126_v39 = vpop.permute.xlu1 %227 }
  0xa5   :  { %v143_v40 = vpop.permute.xlu0 %142 }
  0xa6   :  { %v148_v41 = vpop.permute.xlu1 %147 }
  0xa9   :  { %v2128_v42 = vpop.permute.xlu0 %232 }
  0xaa   :  { %v2130_v43 = vpop.permute.xlu1 %237 }
  0xad   :  { %v153_v44 = vpop.permute.xlu0 %152 }
  0xae   :  { %v158_v48 = vpop.permute.xlu1 %157 }
  0xb1   :  { %v2132_v56 = vpop.permute.xlu0 %242 }
  0xb2   :  { %v2136_v60 = vpop.permute.xlu1 %247 }
  0xb5   :  { %v163_v4 = vpop.permute.xlu0 %162 }
  0xb6   :  { %v168_v9 = vpop.permute.xlu1 %167 }
  0xb9   :  { %v2144_v17 = vpop.permute.xlu0 %252 }
  0xdb   :  { %v1580_v45 = vpop.f32.mrb[0].mxu0 }
  0xdc   :  { %v438_v46 = vadd.f32 %v1580_v45, %v113_v28  ;;  %v429_v47 = vpop.f32.mrb[1].mxu0 }
  0xdd   :  { %v1581_v49 = vpop.f32.mrb[2].mxu0  ;;  %v430_v50 = vadd.f32 %v429_v47, %v103_v21 }
  0xde   :  { %v441_v51 = vadd.f32 %v1581_v49, %v118_v29  ;;  %v432_v52 = vpop.f32.mrb[3].mxu0  ;;  %v558_v53 = vmax.f32 %v438_v46, 0.0 }
  0xdf   :  { %v433_v55 = vadd.f32 %v432_v52, %v108_v23  ;;  %v556_v57 = vmax.f32 %v430_v50, 0.0  ;;  %v2146_v23 = vpop.permute.xlu1 %257 }
  0xe0   :  { %v559_v54 = vmax.f32 %v441_v51, 0.0 }
  0xe1   :  { %v557_v59 = vmax.f32 %v433_v55, 0.0 }
  0xe2   :  { %v2134_v58 = vpack.c.bf16 %v559_v54, %v558_v53 }
  0xe3   :  { %v1584_v61 = vpop.f32.mrb[4].mxu0  ;;  %v2138_v62 = vpack.c.bf16 %v557_v59, %v556_v57  ;;  %v178_v49 = vpop.permute.xlu1 %177 }
  0xe4   :  { %v454_v63 = vadd.f32 %v1584_v61, %v133_v36  ;;  %v445_v0 = vpop.f32.mrb[5].mxu0 }
  0xe5   :  { %v1585_v1 = vpop.f32.mrb[6].mxu0  ;;  %v446_v2 = vadd.f32 %v445_v0, %v123_v32 }
  0xe6   :  { %v457_v3 = vadd.f32 %v1585_v1, %v138_v37  ;;  %v448_v5 = vpop.f32.mrb[7].mxu0  ;;  %v562_v6 = vmax.f32 %v454_v63, 0.0  ;;  %v173_v37 = vpop.permute.xlu0 %172 }
  0xe7   :  { %v449_v8 = vadd.f32 %v448_v5, %v128_v33  ;;  %v560_v10 = vmax.f32 %v446_v2, 0.0 }
  0xe8   :  { %v563_v7 = vmax.f32 %v457_v3, 0.0 }
  0xe9   :  { %v561_v12 = vmax.f32 %v449_v8, 0.0 }
  0xea   :  { %v2140_v11 = vpack.c.bf16 %v563_v7, %v562_v6 }
  0xeb   :  { %v1588_v13 = vpop.f32.mrb[8].mxu0  ;;  %v2142_v14 = vpack.c.bf16 %v561_v12, %v560_v10 }
  0xec   :  { %v470_v15 = vadd.f32 %v1588_v13, %v153_v44  ;;  %v461_v16 = vpop.f32.mrb[9].mxu0 }
  0xed   :  { %v1589_v18 = vpop.f32.mrb[10].mxu0  ;;  %v462_v19 = vadd.f32 %v461_v16, %v143_v40 }
  0xee   :  { %v473_v21 = vadd.f32 %v1589_v18, %v158_v48  ;;  %v464_v24 = vpop.f32.mrb[11].mxu0  ;;  %v566_v25 = vmax.f32 %v470_v15, 0.0 }
  0xef   :  { %v465_v29 = vadd.f32 %v464_v24, %v148_v41  ;;  %v564_v32 = vmax.f32 %v462_v19, 0.0 }
  0xf0   :  { %v567_v28 = vmax.f32 %v473_v21, 0.0 }
  0xf1   :  { %v565_v36 = vmax.f32 %v465_v29, 0.0 }
  0xf2   :  { %v2148_v33 = vpack.c.bf16 %v567_v28, %v566_v25 }
  0xf3   :  { %v1592_v45 = vpop.f32.mrb[12].mxu0  ;;  %v2150_v46 = vpack.c.bf16 %v565_v36, %v564_v32 }
  0xf4   :  { %v486_v44 = vadd.f32 %v1592_v45, %v173_v37  ;;  %v477_v47 = vpop.f32.mrb[13].mxu0 }
  0xf5   :  { %v1593_v50 = vpop.f32.mrb[14].mxu0  ;;  %v478_v40 = vadd.f32 %v477_v47, %v163_v4 }
  0xf6   :  { %v489_v48 = vadd.f32 %v1593_v50, %v178_v49  ;;  %v480_v51 = vpop.f32.mrb[15].mxu0  ;;  %v570_v52 = vmax.f32 %v486_v44, 0.0 }
  0xf7   :  { %v481_v54 = vadd.f32 %v480_v51, %v168_v9  ;;  %v568_v55 = vmax.f32 %v478_v40, 0.0 }
  0xf8   :  { %v571_v53 = vmax.f32 %v489_v48, 0.0 }
  0xf9   :  { %v569_v57 = vmax.f32 %v481_v54, 0.0 }
  0xfa   :  { %v2152_v41 = vpack.c.bf16 %v571_v53, %v570_v52 }
  0xfb   :  { %v1596_v59 = vpop.f32.mrb[16].mxu0  ;;  %v2154_v61 = vpack.c.bf16 %v569_v57, %v568_v55  ;;  %v1690_v55 = vld [vmem:[%s2405_s4 + $0x10] ss:$8 sps:$4 sm:$0xff]   ;;  %v1692_v57 = vld [vmem:[%s2405_s4 + $0x24] ss:$8 sps:$4 sm:$0xff]  }
  0xfc   :  { %v502_v63 = vadd.f32 %v1596_v59, %v2112_v26  ;;  %v493_v0 = vpop.f32.mrb[17].mxu0  ;;  %v1694_v59 = vld [vmem:[%s2405_s4 + $0x74] ss:$8 sps:$4 sm:$0xff]  }
  0xfd   :  { %v1597_v1 = vpop.f32.mrb[18].mxu0  ;;  %v494_v2 = vadd.f32 %v493_v0, %v2102_v20  ;;  %v1698_v0 = vld [vmem:[%s2405_s4 + $0x34] ss:$8 sps:$4 sm:$0xff]  }
  0xfe   :  { %v505_v3 = vadd.f32 %v1597_v1, %v2114_v27  ;;  %v496_v4 = vpop.f32.mrb[19].mxu0  ;;  %v574_v5 = vmax.f32 %v502_v63, 0.0  ;;  %v1697_v63 = vld [vmem:[%s2405_s4 + $0x70] ss:$8 sps:$4 sm:$0xff]   ;;  %v1700_v1 = vld [vmem:[%s2405_s4 + $0x84] ss:$8 sps:$4 sm:$0xff]  }
  0xff   :  { %v497_v7 = vadd.f32 %v496_v4, %v2104_v22  ;;  %v572_v8 = vmax.f32 %v494_v2, 0.0  ;;  %v1702_v2 = vld [vmem:[%s2405_s4 + $0x30] ss:$8 sps:$4 sm:$0xff]   ;;  %v1704_v4 = vld [vmem:[%s2405_s4 + $0x44] ss:$8 sps:$4 sm:$0xff]  }
 0x100   :  { %v575_v6 = vmax.f32 %v505_v3, 0.0  ;;  %v1703_v3 = vld [vmem:[%s2405_s4 + $0x80] ss:$8 sps:$4 sm:$0xff]  }
 0x101   :  { %v573_v10 = vmax.f32 %v497_v7, 0.0  ;;  %v1709_v7 = vld [vmem:[%s2405_s4 + $0x90] ss:$8 sps:$4 sm:$0xff]  }
 0x102   :  { %v597_v9 = vpack.c.bf16 %v575_v6, %v574_v5  ;;  %v1706_v5 = vld [vmem:[%s2405_s4 + $0x94] ss:$8 sps:$4 sm:$0xff]   ;;  %v1708_v6 = vld [vmem:[%s2405_s4 + $0x40] ss:$8 sps:$4 sm:$0xff]  }
 0x103   :  { %v1600_v12 = vpop.f32.mrb[20].mxu0  ;;  %v596_v13 = vpack.c.bf16 %v573_v10, %v572_v8  ;;  %v1710_v8 = vld [vmem:[%s2405_s4 + $0xa4] ss:$8 sps:$4 sm:$0xff]   ;;  %v1713_v10 = vld [vmem:[%s2405_s4 + $0xb4] ss:$8 sps:$4 sm:$0xff]  }
 0x104   :  { %v518_v15 = vadd.f32 %v1600_v12, %v2120_v34  ;;  %v509_v16 = vpop.f32.mrb[21].mxu0  ;;  %v1715_v12 = vld [vmem:[%s2405_s4 + $0xb0] ss:$8 sps:$4 sm:$0xff]  }
 0x105   :  { %v510_v26 = vadd.f32 %v509_v16, %v2116_v30  ;;  %v1601_v18 = vpop.f32.mrb[22].mxu0  ;;  %1426 = vmatprep.subr.bf16.mxu0 %v596_v13  ;;  %1642 = vmatprep.subr.bf16.mxu1 %v596_v13  ;;  %v1716_v13 = vld [vmem:[%s2405_s4 + $0xc4] ss:$8 sps:$4 sm:$0xff]   ;;  %v1719_v16 = vld [vmem:[%s2405_s4 + $0xd4] ss:$8 sps:$4 sm:$0xff]  }
 0x106   :  { %v521_v20 = vadd.f32 %v1601_v18, %v2122_v35  ;;  %v512_v27 = vpop.f32.mrb[23].mxu0  ;;  %1427 = vmatpush3.bf16.msra.mxu0 %v2138_v62  ;;  %1650 = vmatpush3.bf16.msra.mxu1 %v2138_v62  ;;  %v578_v22 = vmax.f32 %v518_v15, 0.0  ;;  %v1718_v15 = vld [vmem:[%s2405_s4 + $0xc0] ss:$8 sps:$4 sm:$0xff]   ;;  %v1722_v18 = vld [vmem:[%s2405_s4 + $0xe4] ss:$8 sps:$4 sm:$0xff]  }
 0x107   :  { %v513_v19 = vadd.f32 %v512_v27, %v2118_v31  ;;  %1428 = vmatprep.subr.bf16.mxu0 %v597_v9  ;;  %1643 = vmatprep.subr.bf16.mxu1 %v597_v9  ;;  %v576_v34 = vmax.f32 %v510_v26, 0.0  ;;  %v1712_v9 = vld [vmem:[%s2405_s4 + $0xa0] ss:$8 sps:$4 sm:$0xff]   ;;  %v1721_v26 = vld [vmem:[%s2405_s4 + $0xd0] ss:$8 sps:$4 sm:$0xff]  }
 0x108   :  { %v579_v21 = vmax.f32 %v521_v20, 0.0  ;;  %v1724_v20 = vld [vmem:[%s2405_s4 + $0xe0] ss:$8 sps:$4 sm:$0xff]   ;;  %v1725_v27 = vld [vmem:[%s2405_s4 + $0xf4] ss:$8 sps:$4 sm:$0xff]  }
 0x109   :  { %v577_v24 = vmax.f32 %v513_v19, 0.0  ;;  %v1727_v19 = vld [vmem:[%s2405_s4 + $0xf0] ss:$8 sps:$4 sm:$0xff]  }
 0x10a   :  { %v599_v25 = vpack.c.bf16 %v579_v21, %v578_v22  ;;  %1429 = vmatpush3.bf16.msra.mxu0 %v2134_v58  ;;  %1651 = vmatpush3.bf16.msra.mxu1 %v2134_v58  ;;  %v2278_v22 = vpop.permute.xlu0 %750  ;;  %v2280_v21 = vpop.permute.xlu1 %755 }
 0x10b   :  { %v598_v30 = vpack.c.bf16 %v577_v24, %v576_v34  ;;  %v1604_v35 = vpop.f32.mrb[24].mxu0 }
 0x10c   :  { %v534_v28 = vadd.f32 %v1604_v35, %v2128_v42  ;;  %v525_v31 = vpop.f32.mrb[25].mxu0 }
 0x10d   :  { %v526_v29 = vadd.f32 %v525_v31, %v2124_v38  ;;  %v1605_v32 = vpop.f32.mrb[26].mxu0  ;;  %1430 = vmatprep.subr.bf16.mxu0 %v598_v30  ;;  %1644 = vmatprep.subr.bf16.mxu1 %v598_v30 }
 0x10e   :  { %v537_v62 = vadd.f32 %v1605_v32, %v2130_v43  ;;  %v528_v36 = vpop.f32.mrb[27].mxu0  ;;  %1431 = vmatpush3.bf16.msra.mxu0 %v2142_v14  ;;  %1652 = vmatpush3.bf16.msra.mxu1 %v2142_v14  ;;  %v582_v45 = vmax.f32 %v534_v28, 0.0  ;;  %v671_v34 = vpop.permute.xlu0 %670 }
 0x10f   :  { %v529_v37 = vadd.f32 %v528_v36, %v2126_v39  ;;  %1432 = vmatprep.subr.bf16.mxu0 %v599_v25  ;;  %1645 = vmatprep.subr.bf16.mxu1 %v599_v25  ;;  %v580_v42 = vmax.f32 %v526_v29, 0.0  ;;  %v676_v24 = vpop.permute.xlu1 %675 }
 0x110   :  { %v583_v58 = vmax.f32 %v537_v62, 0.0 }
 0x111   :  { %v581_v44 = vmax.f32 %v529_v37, 0.0 }
 0x112   :  { %v601_v47 = vpack.c.bf16 %v583_v58, %v582_v45  ;;  %1433 = vmatpush3.bf16.msra.mxu0 %v2140_v11  ;;  %1653 = vmatpush3.bf16.msra.mxu1 %v2140_v11  ;;  %v2282_v25 = vpop.permute.xlu0 %760  ;;  %v1182_v58 = vld [vmem:[%s2407_s6 + $0x8] sm:$0xff] }
 0x113   :  { %v600_v38 = vpack.c.bf16 %v581_v44, %v580_v42  ;;  %v1608_v43 = vpop.f32.mrb[28].mxu0  ;;  %v2284_v30 = vpop.permute.xlu1 %765 }
 0x114   :  { %v550_v49 = vadd.f32 %v1608_v43, %v2144_v17  ;;  %v541_v39 = vpop.f32.mrb[29].mxu0 }
 0x115   :  { %v542_v50 = vadd.f32 %v541_v39, %v2132_v56  ;;  %v1609_v40 = vpop.f32.mrb[30].mxu0  ;;  %1434 = vmatprep.subr.bf16.mxu0 %v600_v38  ;;  %1646 = vmatprep.subr.bf16.mxu1 %v600_v38 }
 0x116   :  { %v553_v14 = vadd.f32 %v1609_v40, %v2146_v23  ;;  %v544_v48 = vpop.f32.mrb[31].mxu0  ;;  %1435 = vmatpush3.bf16.msra.mxu0 %v2150_v46  ;;  %1654 = vmatpush3.bf16.msra.mxu1 %v2150_v46  ;;  %v586_v52 = vmax.f32 %v550_v49, 0.0  ;;  %v1683_v23 = vld [vmem:[%s2405_s4 + $0x50] ss:$8 sps:$4 sm:$0xff]   ;;  %v1688_v46 = vld [vmem:[%s2405_s4 + $0x64] ss:$8 sps:$4 sm:$0xff]   ;;  %v681_v35 = vpop.permute.xlu0 %680 }
 0x117   :  { %v545_v51 = vadd.f32 %v544_v48, %v2136_v60  ;;  %1436 = vmatprep.subr.bf16.mxu0 %v601_v47  ;;  %1647 = vmatprep.subr.bf16.mxu1 %v601_v47  ;;  %v584_v17 = vmax.f32 %v542_v50, 0.0  ;;  %v1680_v60 = vld [vmem:[%s2405_s4] ss:$8 sps:$4 sm:$0xff]   ;;  %v686_v28 = vpop.permute.xlu1 %685 }
 0x118   :  { %v587_v11 = vmax.f32 %v553_v14, 0.0 }
 0x119   :  { %v585_v53 = vmax.f32 %v545_v51, 0.0 }
 0x11a   :  { %v603_v54 = vpack.c.bf16 %v587_v11, %v586_v52  ;;  %1437 = vmatpush3.bf16.msra.mxu0 %v2148_v33  ;;  %1655 = vmatpush3.bf16.msra.mxu1 %v2148_v33  ;;  %v1686_v33 = vld [vmem:[%s2405_s4 + $0x14] ss:$8 sps:$4 sm:$0xff]   ;;  %v2286_v31 = vpop.permute.xlu0 %770 }
 0x11b   :  { %v602_v56 = vpack.c.bf16 %v585_v53, %v584_v17  ;;  %v2288_v29 = vpop.permute.xlu1 %775 }
 0x11d   :  { %1438 = vmatprep.subr.bf16.mxu0 %v602_v56  ;;  %1648 = vmatprep.subr.bf16.mxu1 %v602_v56 }
 0x11e   :  { %1439 = vmatpush3.bf16.msra.mxu0 %v2154_v61  ;;  %1656 = vmatpush3.bf16.msra.mxu1 %v2154_v61  ;;  %v1696_v61 = vld [vmem:[%s2405_s4 + $0x20] ss:$8 sps:$4 sm:$0xff]   ;;  %v2290_v32 = vpop.permute.xlu0 %690 }
 0x11f   :  { %1440 = vmatprep.subr.bf16.mxu0 %v603_v54  ;;  %1649 = vmatprep.subr.bf16.mxu1 %v603_v54  ;;  %v2292_v62 = vpop.permute.xlu1 %695 }
 0x122   :  { %1441 = vmatpush3.bf16.msra.mxu0 %v2152_v41  ;;  %1657 = vmatpush3.bf16.msra.mxu1 %v2152_v41  ;;  %v1691_v41 = vld [vmem:[%s2405_s4 + $0x60] ss:$8 sps:$4 sm:$0xff]   ;;  %v2294_v36 = vpop.permute.xlu0 %780 }
 0x123   :  { %v2296_v37 = vpop.permute.xlu1 %785 }
 0x125   :  { %1021 = vmatmul.mubr.bf16.vlgmr.msra.gmra.mrb[32].mxu0 %v1680_v60  ;;  %1061 = vmatmul.mubr.bf16.vlgmr.msra.gmra.mrb[0].mxu1 %v1683_v23 }
 0x126   :  { %1028 = vmatprep.mubr.bf16.mxu0 %v1686_v33  ;;  %1068 = vmatprep.mubr.bf16.mxu1 %v1688_v46  ;;  %v2298_v45 = vpop.permute.xlu0 %700 }
 0x127   :  { %v2303_v42 = vpop.permute.xlu1 %705 }
 0x12a   :  { %v2305_v44 = vpop.permute.xlu0 %790 }
 0x12b   :  { %v2307_v47 = vpop.permute.xlu1 %795 }
 0x12d   :  { %1029 = vmatmul.mubr.bf16.gmra.mrb[36].mxu0 %v1690_v55  ;;  %1069 = vmatmul.mubr.bf16.gmra.mrb[4].mxu1 %v1691_v41 }
 0x12e   :  { %1036 = vmatprep.mubr.bf16.mxu0 %v1692_v57  ;;  %1076 = vmatprep.mubr.bf16.mxu1 %v1694_v59  ;;  %v2309_v38 = vpop.permute.xlu0 %710 }
 0x12f   :  { %v2311_v43 = vpop.permute.xlu1 %715 }
 0x132   :  { %v2313_v49 = vpop.permute.xlu0 %800 }
 0x133   :  { %v2315_v39 = vpop.permute.xlu1 %805 }
 0x135   :  { %1037 = vmatmul.mubr.bf16.gmra.mrb[40].mxu0 %v1696_v61  ;;  %1077 = vmatmul.mubr.bf16.gmra.mrb[8].mxu1 %v1697_v63 }
 0x136   :  { %1044 = vmatprep.mubr.bf16.mxu0 %v1698_v0  ;;  %1084 = vmatprep.mubr.bf16.mxu1 %v1700_v1  ;;  %v721_v50 = vpop.permute.xlu0 %720 }
 0x137   :  { %v726_v40 = vpop.permute.xlu1 %725 }
 0x13a   :  { %v2317_v14 = vpop.permute.xlu0 %810 }
 0x13b   :  { %v2319_v48 = vpop.permute.xlu1 %815 }
 0x13d   :  { %1045 = vmatmul.mubr.bf16.gmra.mrb[44].mxu0 %v1702_v2  ;;  %1085 = vmatmul.mubr.bf16.gmra.mrb[12].mxu1 %v1703_v3 }
 0x13e   :  { %1052 = vmatprep.mubr.bf16.mxu0 %v1704_v4  ;;  %1092 = vmatprep.mubr.bf16.mxu1 %v1706_v5  ;;  %v731_v51 = vpop.permute.xlu0 %730 }
 0x13f   :  { %v736_v0 = vpop.permute.xlu1 %735 }
 0x142   :  { %v2321_v1 = vpop.permute.xlu0 %820 }
 0x145   :  { %1053 = vmatmul.mubr.bf16.gmra.mrb[48].mxu0 %v1708_v6  ;;  %1093 = vmatmul.mubr.bf16.gmra.mrb[16].mxu1 %v1709_v7 }
 0x146   :  { %1100 = vmatprep.mubr.bf16.mxu1 %v1710_v8  ;;  %1261 = vmatprep.mubr.f32.mxu0 %v1182_v58 }
 0x14d   :  { %1101 = vmatmul.mubr.bf16.gmra.mrb[20].mxu1 %v1712_v9 }
 0x14e   :  { %1108 = vmatprep.mubr.bf16.mxu1 %v1713_v10 }
 0x155   :  { %1109 = vmatmul.mubr.bf16.gmra.mrb[24].mxu1 %v1715_v12 }
 0x156   :  { %1116 = vmatprep.mubr.bf16.mxu1 %v1716_v13 }
 0x15d   :  { %1117 = vmatmul.mubr.bf16.gmra.mrb[28].mxu1 %v1718_v15 }
 0x15e   :  { %1124 = vmatprep.mubr.bf16.mxu1 %v1719_v16 }
 0x165   :  { %1125 = vmatmul.mubr.bf16.gmra.mrb[32].mxu1 %v1721_v26 }
 0x166   :  { %1132 = vmatprep.mubr.bf16.mxu1 %v1722_v18 }
 0x16d   :  { %1133 = vmatmul.mubr.bf16.gmra.mrb[36].mxu1 %v1724_v20 }
 0x16e   :  { %1140 = vmatprep.mubr.bf16.mxu1 %v1725_v27 }
 0x175   :  { %1141 = vmatmul.mubr.bf16.gmra.mrb[40].mxu1 %v1727_v19 }
 0x1f8   :  { %v1442_v52 = vpop.f32.mrb[32].mxu0  ;;  %v1472_v11 = vpop.f32.mrb[0].mxu1 }
 0x1f9   :  { %v1443_v17 = vpop.f32.mrb[33].mxu0  ;;  %v1473_v53 = vpop.f32.mrb[1].mxu1 }
 0x1fa   :  { %v1444_v54 = vadd.f32 %v1443_v17, %v1442_v52  ;;  %v1474_v56 = vadd.f32 %v1473_v53, %v1472_v11  ;;  %v1445_v60 = vpop.f32.mrb[34].mxu0  ;;  %v1475_v23 = vpop.f32.mrb[2].mxu1 }
 0x1fb   :  { %v1446_v33 = vpop.f32.mrb[35].mxu0  ;;  %v1476_v46 = vpop.f32.mrb[3].mxu1 }
 0x1fc   :  { %v1023_v55 = vadd.f32 %v1444_v54, %v671_v34  ;;  %v1063_v41 = vadd.f32 %v1474_v56, %v721_v50  ;;  %v1447_v57 = vadd.f32 %v1446_v33, %v1445_v60  ;;  %v1477_v59 = vadd.f32 %v1476_v46, %v1475_v23  ;;  %v741_v52 = vpop.permute.xlu0 %740 }
 0x1fe   :  { %v1026_v61 = vadd.f32 %v1447_v57, %v676_v24  ;;  %v1066_v63 = vadd.f32 %v1477_v59, %v726_v40  ;;  %v1149_v2 = vmax.f32 %v1023_v55, 0.0  ;;  %v1159_v3 = vmax.f32 %v1063_v41, 0.0  ;;  %v2327_v40 = vpop.permute.xlu1 %825 }
 0x200   :  { %v1150_v4 = vmax.f32 %v1026_v61, 0.0  ;;  %v1160_v5 = vmax.f32 %v1066_v63, 0.0  ;;  %v1448_v6 = vpop.f32.mrb[36].mxu0  ;;  %v1478_v7 = vpop.f32.mrb[4].mxu1 }
 0x201   :  { %v1449_v8 = vpop.f32.mrb[37].mxu0  ;;  %v1479_v9 = vpop.f32.mrb[5].mxu1 }
 0x202   :  { %v2323_v10 = vpack.c.bf16 %v1150_v4, %v1149_v2  ;;  %v2325_v12 = vpack.c.bf16 %v1160_v5, %v1159_v3  ;;  %v1450_v13 = vadd.f32 %v1449_v8, %v1448_v6  ;;  %v1480_v15 = vadd.f32 %v1479_v9, %v1478_v7  ;;  %v1451_v16 = vpop.f32.mrb[38].mxu0  ;;  %v1481_v26 = vpop.f32.mrb[6].mxu1 }
 0x203   :  { %v1452_v18 = vpop.f32.mrb[39].mxu0  ;;  %v1482_v20 = vpop.f32.mrb[7].mxu1 }
 0x204   :  { %v1031_v27 = vadd.f32 %v1450_v13, %v681_v35  ;;  %v1071_v19 = vadd.f32 %v1480_v15, %v731_v51  ;;  %v1453_v34 = vadd.f32 %v1452_v18, %v1451_v16  ;;  %v1483_v24 = vadd.f32 %v1482_v20, %v1481_v26  ;;  %v746_v3 = vpop.permute.xlu1 %745 }
 0x206   :  { %v1034_v58 = vadd.f32 %v1453_v34, %v686_v28  ;;  %v1074_v50 = vadd.f32 %v1483_v24, %v736_v0  ;;  %v1151_v11 = vmax.f32 %v1031_v27, 0.0  ;;  %v1161_v17 = vmax.f32 %v1071_v19, 0.0 }
 0x208   :  { %v1152_v53 = vmax.f32 %v1034_v58, 0.0  ;;  %v1162_v54 = vmax.f32 %v1074_v50, 0.0  ;;  %v1454_v56 = vpop.f32.mrb[40].mxu0  ;;  %v1484_v60 = vpop.f32.mrb[8].mxu1 }
 0x209   :  { %v1455_v23 = vpop.f32.mrb[41].mxu0  ;;  %v1485_v33 = vpop.f32.mrb[9].mxu1 }
 0x20a   :  { %v2329_v46 = vpack.c.bf16 %v1152_v53, %v1151_v11  ;;  %v2331_v55 = vpack.c.bf16 %v1162_v54, %v1161_v17  ;;  %v1456_v35 = vadd.f32 %v1455_v23, %v1454_v56  ;;  %v1486_v51 = vadd.f32 %v1485_v33, %v1484_v60  ;;  %v1457_v41 = vpop.f32.mrb[42].mxu0  ;;  %v1487_v28 = vpop.f32.mrb[10].mxu1 }
 0x20b   :  { %v1458_v57 = vpop.f32.mrb[43].mxu0  ;;  %v1488_v59 = vpop.f32.mrb[11].mxu1 }
 0x20c   :  { %v1039_v61 = vadd.f32 %v1456_v35, %v2290_v32  ;;  %v1079_v63 = vadd.f32 %v1486_v51, %v741_v52  ;;  %v1459_v0 = vadd.f32 %v1458_v57, %v1457_v41  ;;  %v1489_v2 = vadd.f32 %v1488_v59, %v1487_v28 }
 0x20e   :  { %v1042_v4 = vadd.f32 %v1459_v0, %v2292_v62  ;;  %v1082_v5 = vadd.f32 %v1489_v2, %v746_v3  ;;  %v1153_v6 = vmax.f32 %v1039_v61, 0.0  ;;  %v1163_v7 = vmax.f32 %v1079_v63, 0.0 }
 0x210   :  { %v1154_v8 = vmax.f32 %v1042_v4, 0.0  ;;  %v1164_v9 = vmax.f32 %v1082_v5, 0.0  ;;  %v1460_v13 = vpop.f32.mrb[44].mxu0  ;;  %v1490_v15 = vpop.f32.mrb[12].mxu1 }
 0x211   :  { %v1461_v16 = vpop.f32.mrb[45].mxu0  ;;  %v1491_v26 = vpop.f32.mrb[13].mxu1 }
 0x212   :  { %v2335_v18 = vpack.c.bf16 %v1154_v8, %v1153_v6  ;;  %v2337_v20 = vpack.c.bf16 %v1164_v9, %v1163_v7  ;;  %v1462_v32 = vadd.f32 %v1461_v16, %v1460_v13  ;;  %v1492_v27 = vadd.f32 %v1491_v26, %v1490_v15  ;;  %v1463_v19 = vpop.f32.mrb[46].mxu0  ;;  %v1493_v34 = vpop.f32.mrb[14].mxu1 }
 0x213   :  { %v1464_v24 = vpop.f32.mrb[47].mxu0  ;;  %v1494_v58 = vpop.f32.mrb[15].mxu1 }
 0x214   :  { %v1047_v62 = vadd.f32 %v1462_v32, %v2298_v45  ;;  %v1087_v50 = vadd.f32 %v1492_v27, %v2278_v22  ;;  %v1465_v52 = vadd.f32 %v1464_v24, %v1463_v19  ;;  %v1495_v11 = vadd.f32 %v1494_v58, %v1493_v34 }
 0x216   :  { %v1050_v17 = vadd.f32 %v1465_v52, %v2303_v42  ;;  %v1090_v53 = vadd.f32 %v1495_v11, %v2280_v21  ;;  %v1155_v54 = vmax.f32 %v1047_v62, 0.0  ;;  %v1165_v56 = vmax.f32 %v1087_v50, 0.0 }
 0x218   :  { %v1156_v60 = vmax.f32 %v1050_v17, 0.0  ;;  %v1166_v23 = vmax.f32 %v1090_v53, 0.0  ;;  %v1466_v33 = vpop.f32.mrb[48].mxu0  ;;  %v1496_v35 = vpop.f32.mrb[16].mxu1 }
 0x219   :  { %v1467_v51 = vpop.f32.mrb[49].mxu0  ;;  %v1497_v41 = vpop.f32.mrb[17].mxu1 }
 0x21a   :  { %v1624_v28 = vpack.c.bf16 %v1156_v60, %v1155_v54  ;;  %v1468_v57 = vadd.f32 %v1467_v51, %v1466_v33  ;;  %v1498_v59 = vadd.f32 %v1497_v41, %v1496_v35  ;;  %v1469_v45 = vpop.f32.mrb[50].mxu0  ;;  %v1499_v61 = vpop.f32.mrb[18].mxu1  ;;  %v1610_v22 = vpack.c.bf16 %v1166_v23, %v1165_v56 }
 0x21b   :  { %v1470_v63 = vpop.f32.mrb[51].mxu0  ;;  %v1500_v0 = vpop.f32.mrb[19].mxu1 }
 0x21c   :  { %v1055_v42 = vadd.f32 %v1468_v57, %v2309_v38  ;;  %v1095_v21 = vadd.f32 %v1498_v59, %v2282_v25  ;;  %v1471_v2 = vadd.f32 %v1470_v63, %v1469_v45  ;;  %v1501_v3 = vadd.f32 %v1500_v0, %v1499_v61  ;;  %1611 = vmatprep.subr.bf16.mxu0 %v1610_v22 }
 0x21d   :  { %1613 = vmatpush3.bf16.msra.mxu0 %v2323_v10 }
 0x21e   :  { %v1058_v4 = vadd.f32 %v1471_v2, %v2311_v43  ;;  %v1098_v5 = vadd.f32 %v1501_v3, %v2284_v30  ;;  %v1157_v6 = vmax.f32 %v1055_v42, 0.0  ;;  %v1167_v7 = vmax.f32 %v1095_v21, 0.0 }
 0x220   :  { %v1158_v8 = vmax.f32 %v1058_v4, 0.0  ;;  %v1168_v9 = vmax.f32 %v1098_v5, 0.0  ;;  %v1502_v13 = vpop.f32.mrb[20].mxu1 }
 0x221   :  { %v1503_v15 = vpop.f32.mrb[21].mxu1 }
 0x222   :  { %v1628_v16 = vpack.c.bf16 %v1158_v8, %v1157_v6  ;;  %v1504_v26 = vadd.f32 %v1503_v15, %v1502_v13  ;;  %v1505_v38 = vpop.f32.mrb[22].mxu1  ;;  %v1614_v32 = vpack.c.bf16 %v1168_v9, %v1167_v7 }
 0x223   :  { %v1506_v25 = vpop.f32.mrb[23].mxu1 }
 0x224   :  { %v1103_v27 = vadd.f32 %v1504_v26, %v2286_v31  ;;  %v1507_v19 = vadd.f32 %v1506_v25, %v1505_v38  ;;  %1615 = vmatprep.subr.bf16.mxu0 %v1614_v32 }
 0x225   :  { %1617 = vmatpush3.bf16.msra.mxu0 %v2329_v46 }
 0x226   :  { %v1106_v43 = vadd.f32 %v1507_v19, %v2288_v29  ;;  %v1169_v30 = vmax.f32 %v1103_v27, 0.0 }
 0x228   :  { %v1170_v10 = vmax.f32 %v1106_v43, 0.0  ;;  %v1508_v34 = vpop.f32.mrb[24].mxu1 }
 0x229   :  { %v1509_v24 = vpop.f32.mrb[25].mxu1 }
 0x22a   :  { %v1510_v58 = vadd.f32 %v1509_v24, %v1508_v34  ;;  %v1511_v62 = vpop.f32.mrb[26].mxu1  ;;  %v1618_v50 = vpack.c.bf16 %v1170_v10, %v1169_v30  ;;  %v1195_v24 = vpop.permute.xlu0 %1194 }
 0x22b   :  { %v1512_v52 = vpop.f32.mrb[27].mxu1 }
 0x22c   :  { %v1111_v11 = vadd.f32 %v1510_v58, %v2294_v36  ;;  %v1513_v17 = vadd.f32 %v1512_v52, %v1511_v62  ;;  %1619 = vmatprep.subr.bf16.mxu0 %v1618_v50 }
 0x22d   :  { %1621 = vmatpush3.bf16.msra.mxu0 %v2335_v18 }
 0x22e   :  { %v1114_v31 = vadd.f32 %v1513_v17, %v2296_v37  ;;  %v1171_v53 = vmax.f32 %v1111_v11, 0.0  ;;  %v1190_v17 = vpop.permute.xlu1 %1189 }
 0x230   :  { %v1172_v46 = vmax.f32 %v1114_v31, 0.0  ;;  %v1514_v54 = vpop.f32.mrb[28].mxu1  ;;  %v1276_v31 = vld [vmem:[%s2402_s1] sm:$0xff] }
 0x231   :  { %v1515_v29 = vpop.f32.mrb[29].mxu1 }
 0x232   :  { %v1516_v56 = vadd.f32 %v1515_v29, %v1514_v54  ;;  %v1517_v60 = vpop.f32.mrb[30].mxu1  ;;  %v1622_v23 = vpack.c.bf16 %v1172_v46, %v1171_v53 }
 0x233   :  { %v1518_v33 = vpop.f32.mrb[31].mxu1 }
 0x234   :  { %v1119_v35 = vadd.f32 %v1516_v56, %v2305_v44  ;;  %v1519_v51 = vadd.f32 %v1518_v33, %v1517_v60  ;;  %1623 = vmatprep.subr.bf16.mxu0 %v1622_v23 }
 0x235   :  { %1625 = vmatpush3.bf16.msra.mxu0 %v1624_v28 }
 0x236   :  { %v1122_v36 = vadd.f32 %v1519_v51, %v2307_v47  ;;  %v1173_v41 = vmax.f32 %v1119_v35, 0.0 }
 0x238   :  { %v1174_v57 = vmax.f32 %v1122_v36, 0.0  ;;  %v1520_v18 = vpop.f32.mrb[32].mxu1 }
 0x239   :  { %v1521_v59 = vpop.f32.mrb[33].mxu1 }
 0x23a   :  { %v1522_v37 = vadd.f32 %v1521_v59, %v1520_v18  ;;  %v1523_v45 = vpop.f32.mrb[34].mxu1  ;;  %v1626_v61 = vpack.c.bf16 %v1174_v57, %v1173_v41 }
 0x23b   :  { %v1524_v22 = vpop.f32.mrb[35].mxu1 }
 0x23c   :  { %v1127_v63 = vadd.f32 %v1522_v37, %v2313_v49  ;;  %v1525_v0 = vadd.f32 %v1524_v22, %v1523_v45  ;;  %1627 = vmatprep.subr.bf16.mxu0 %v1626_v61 }
 0x23d   :  { %1629 = vmatpush3.bf16.msra.mxu0 %v1628_v16 }
 0x23e   :  { %v1130_v44 = vadd.f32 %v1525_v0, %v2315_v39  ;;  %v1175_v42 = vmax.f32 %v1127_v63, 0.0 }
 0x240   :  { %v1176_v21 = vmax.f32 %v1130_v44, 0.0  ;;  %v1526_v28 = vpop.f32.mrb[36].mxu1 }
 0x241   :  { %v1527_v2 = vpop.f32.mrb[37].mxu1 }
 0x242   :  { %v1528_v47 = vadd.f32 %v1527_v2, %v1526_v28  ;;  %v1529_v3 = vpop.f32.mrb[38].mxu1  ;;  %v1630_v4 = vpack.c.bf16 %v1176_v21, %v1175_v42 }
 0x243   :  { %v1530_v5 = vpop.f32.mrb[39].mxu1 }
 0x244   :  { %v1135_v6 = vadd.f32 %v1528_v47, %v2317_v14  ;;  %v1531_v7 = vadd.f32 %v1530_v5, %v1529_v3  ;;  %1631 = vmatprep.subr.bf16.mxu0 %v1630_v4 }
 0x245   :  { %1633 = vmatpush3.bf16.msra.mxu0 %v2325_v12 }
 0x246   :  { %v1138_v49 = vadd.f32 %v1531_v7, %v2319_v48  ;;  %v1177_v8 = vmax.f32 %v1135_v6, 0.0  ;;  %v1181_v48 = vld [vmem:[%s2407_s6] sm:$0xff] }
 0x248   :  { %v1178_v9 = vmax.f32 %v1138_v49, 0.0  ;;  %v1532_v13 = vpop.f32.mrb[40].mxu1 }
 0x249   :  { %v1533_v39 = vpop.f32.mrb[41].mxu1 }
 0x24a   :  { %v1534_v15 = vadd.f32 %v1533_v39, %v1532_v13  ;;  %v1535_v16 = vpop.f32.mrb[42].mxu1  ;;  %v1634_v26 = vpack.c.bf16 %v1178_v9, %v1177_v8 }
 0x24b   :  { %v1536_v38 = vpop.f32.mrb[43].mxu1 }
 0x24c   :  { %v1143_v32 = vadd.f32 %v1534_v15, %v2321_v1  ;;  %v1537_v25 = vadd.f32 %v1536_v38, %v1535_v16  ;;  %1635 = vmatprep.subr.bf16.mxu0 %v1634_v26  ;;  %v1184_v1 = vld [vmem:[%s2407_s6 + $0x18] sm:$0xff] }
 0x24d   :  { %1637 = vmatpush3.bf16.msra.mxu0 %v2331_v55 }
 0x24e   :  { %v1146_v14 = vadd.f32 %v1537_v25, %v2327_v40  ;;  %v1179_v27 = vmax.f32 %v1143_v32, 0.0  ;;  %v1183_v40 = vld [vmem:[%s2407_s6 + $0x10] sm:$0xff]  ;;  %s1785_s6 = smov [#allocation2]  }
 0x24f   :  { %s1321_s10 = sshll.u32 %s1785_s6, 4  ;;  %s1322_s10 = int_to_ptr.vmem [resolvable:$true] %s1321_s10 }
 0x250   :  { %v1180_v12 = vmax.f32 %v1146_v14, 0.0  ;;  %s1736_s11 = scalar_lea.vmem %s1322_s10, 128  ;;  %p1741_p1 = scmp.lt.s32.totalorder %s1322_s10, %s1322_s10 }
 0x251   :  { %p1737_p0 = scmp.ne.s32.totalorder %s1322_s10, %s1736_s11  ;;  %p1742_p2 = scmp.lt.s32.totalorder %s1736_s11, %s1736_s11 }
 0x252   :  { %v1638_v19 = vpack.c.bf16 %v1180_v12, %v1179_v27 }
 0x253   :  { %p1743_p3 = por %p1742_p2, %p1741_p1 }
 0x254   :  { %1639 = vmatprep.subr.bf16.mxu0 %v1638_v19 }
 0x255   :  { %1641 = vmatpush3.bf16.msra.mxu0 %v2337_v20  ;;  %p1744_p4 = pnand %p1743_p3, %p1737_p0 }
 0x258   :  { %1262 = vmatmul.mubr.f32.vlgmr.msra.gmra.mrb[52].mxu0 %v1181_v48 }
 0x259   :  { %1266 = vmatprep.mubr.f32.mxu0 %v1184_v1 }
 0x25c   :  { %1267 = vmatmul.mubr.f32.gmra.mrb[54].mxu0 %v1183_v40 }
 0x32b   :  { %v1570_v55 = vpop.f32.mrb[52].mxu0 }
 0x32c   :  { %v1571_v43 = vpop.f32.mrb[53].mxu0 }
 0x32d   :  { %v1572_v30 = vadd.f32 %v1571_v43, %v1570_v55 }
 0x32f   :  { %v1573_v10 = vpop.f32.mrb[54].mxu0  ;;  %v1264_v53 = vadd.f32 %v1572_v30, %v1190_v17 }
 0x330   :  { %v1574_v20 = vpop.f32.mrb[55].mxu0 }
 0x331   :  { %v1575_v34 = vadd.f32 %v1574_v20, %v1573_v10 }
 0x333   :  { %v1269_v58 = vadd.f32 %v1575_v34, %v1195_v24 }
 0x335   :  { %v1272_v62 = vmax.f32 %v1269_v58, -20.0 }
 0x337   :  { %v1273_v50 = vmin.f32 %v1272_v62, 2.0 }
 0x339   :  { %v1274_v52 = vmul.f32 1.442695, %v1273_v50 }
 0x33b   :  { %1728 = vpow2.f32 %v1274_v52 }
 0x345   :  { %v1729_v11 = vpop.eup %1728 }
 0x346   :  { %v1277_v46 = vmul.f32 %v1729_v11, %v1276_v31 }
 0x348   :  { %v1278_v54 = vadd.f32 %v1277_v46, %v1264_v53 }
 0x34a   :  { %v1282_v29 = vmul.f32 -2.0, %v1278_v54  ;;  %1730 = vtanh.f32 %v1278_v54 }
 0x34c   :  { %v1286_v56 = vand.u32 2147483647, %v1282_v29 }
 0x34e   :  { %v1287_v60 = vsub.f32 0.0, %v1286_v56 }
 0x350   :  { %v1288_v23 = vmul.f32 1.442695, %v1287_v60 }
 0x352   :  { %1732 = vpow2.f32 %v1288_v23 }
 0x354   :  { %v1731_v33 = vpop.eup %1730 }
 0x355   :  { %1280 = vst [vmem:[#allocation2] sm:$0xff] %v1731_v33 }
 0x356   :  { %1747 = shalt.err (!%p1744_p4)
}
 0x357   :  { %s1748_s13 = scalar_lea.hbm %s2409_s8, 128 }
 0x358   :  { %p1749_p5 = scmp.ne.s32.totalorder %s2409_s8, %s1748_s13  ;;  %p1752_p6 = scmp.lt.u32.totalorder %s1748_s13, %s2409_s8 }
 0x35a   :  { %p1754_p7 = pnand %p1752_p6, %p1749_p5 }
 0x35c   :  { %1757 = shalt.err (!%p1754_p7)
}
 0x35d   :  { %1324 = dma.vmem_to_hbm [thread:$0]  %s1322_s10, 128, %s2409_s8, [#allocation3]   ;;  %v1733_v35 = vpop.eup %1732  ;;  %v1303_v45 = vmul.f32 -0.5, %v1276_v31  ;;  %v1283_v61 = vmax.f32 %v1282_v29, 0.0  ;;  %v1281_v0 = vsub.f32 0.6931472, %v1278_v54  ;;  %vm1284_vm2 = vcmp.ne.f32.partialorder %v1282_v29, %v1282_v29 }
 0x35e   :  { %v1290_v51 = vadd.f32 1.0, %v1733_v35  ;;  %v1293_v36 = vmul.f32 -0.5, %v1733_v35  ;;  %v1296_v57 = vand.u32 2147483647, %v1733_v35  ;;  %s1786_s8 = smov [#allocation4]  }
 0x35f   :  { %v1304_v44 = vmul.f32 %v1303_v45, %v1276_v31  ;;  %s1331_s18 = sshll.u32 %s1786_s8, 4  ;;  %s1332_s18 = int_to_ptr.vmem [resolvable:$true] %s1331_s18 }
 0x360   :  { %1734 = vlog2.f32 %v1290_v51  ;;  %v1294_v41 = vadd.f32 1.0, %v1293_v36  ;;  %vm1297_vm1 = vcmp.lt.f32.partialorder %v1296_v57, 0.0004427343  ;;  %s1758_s19 = scalar_lea.vmem %s1332_s18, 16  ;;  %s1762_s20 = scalar_lea.vmem %s1332_s18, 32 }
 0x361   :  { %v1305_v2 = vsub.f32 %v1304_v44, %v1273_v50  ;;  %p1759_p8 = scmp.ne.s32.totalorder %s1332_s18, %s1758_s19  ;;  %p1763_p9 = scmp.lt.s32.totalorder %s1332_s18, %s1332_s18 }
 0x362   :  { %v1295_v37 = vmul.f32 %v1733_v35, %v1294_v41  ;;  %p1764_p10 = scmp.lt.s32.totalorder %s1762_s20, %s1758_s19 }
 0x364   :  { %p1765_p11 = por %p1764_p10, %p1763_p9 }
 0x366   :  { %p1766_p12 = pnand %p1765_p11, %p1759_p8 }
 0x36a   :  { %v1735_v18 = vpop.eup %1734 }
 0x36b   :  { %v1292_v59 = vmul.f32 0.6931472, %v1735_v18 }
 0x36d   :  { %v1298_v22 = vsel %vm1297_vm1, %v1295_v37, %v1292_v59 }
 0x36e   :  { %v1299_v63 = vadd.f32 %v1298_v22, %v1283_v61 }
 0x370   :  { %v1300_v42 = vsel %vm1284_vm2, %v1282_v29, %v1299_v63 }
 0x371   :  { %v1301_v21 = vsub.f32 %v1281_v0, %v1300_v42 }
 0x373   :  { %v1302_v28 = vmul.f32 2.0, %v1301_v21 }
 0x375   :  { %v1306_v47 = vsub.f32 %v1305_v2, %v1302_v28 }
 0x377   :  { %v1307_v3 = vrot.slane %v1306_v47, 4 }
 0x379   :  { %v1308_v4 = vadd.f32 %v1307_v3, %v1306_v47 }
 0x37b   :  { %v1309_v5 = vrot.slane %v1308_v4, 2 }
 0x37d   :  { %v1310_v6 = vadd.f32 %v1309_v5, %v1308_v4 }
 0x37f   :  { %v1311_v7 = vrot.slane %v1310_v6, 1 }
 0x381   :  { %v1312_v49 = vadd.f32 %v1311_v7, %v1310_v6 }
 0x383   :  { %v1408_v8 = vadd.f32 -3.675754, %v1312_v49 }
 0x385   :  { %1314 = vst [vmem:[#allocation4] sm:$0x1] %v1408_v8 }
 0x386   :  { %1769 = shalt.err (!%p1766_p12)
}
 0x387   :  { %s1770_s0 = scalar_lea.hbm %s2410_s9, 16 }
 0x388   :  { %p1771_p13 = scmp.ne.s32.totalorder %s2410_s9, %s1770_s0  ;;  %p1774_p0 = scmp.lt.u32.totalorder %s1770_s0, %s2410_s9 }
 0x38a   :  { %p1776_p1 = pnand %p1774_p0, %p1771_p13 }
 0x38c   :  { %1779 = shalt.err (!%p1776_p1)
}
 0x38d   :  { %1334 = dma.vmem_to_hbm [thread:$0]  %s1332_s18, 16, %s2410_s9, [#allocation5]  }
 0x38e   :  { %1780 = dma.done.wait [#allocation3], 128  }
 0x38f   :  { %1781 = vsyncadd [#allocation3], 4294967168 }
 0x390   :  { %1782 = dma.done.wait [#allocation5], 16  }
 0x391   :  { %1783 = vsyncadd [#allocation5], 4294967280 }
 0x392   :  { %1341 = vsyncpa [#allocation3], 1 }
 0x393   :  { %1342 = vsyncpa [#allocation5], 1 }

</bundles_post_ra>
